<compile_context>
chip_gen: v5e
topology: v5e:2x2
jax: 0.10.0
libtpu: 0.0.40
codegen_flags: <defaults>
</compile_context>

<pallas_src>
import functools
import math

import jax
import jax.numpy as jnp
from jax.experimental import pallas as pl
from jax.experimental.pallas import tpu as pltpu


# ---------------------------------------------------------------------------
# Fused per-batch kernel
#   xt_ref : (T, C*F)  per-batch input slab in (time, channel-major feature) layout
#   w*_ref : (C*F, C*F) folded projection weights, b*_ref: (1, C*F) folded biases
#   out_ref: (T, C*F)  output in the same layout (un-transposed by the wrapper)
# ---------------------------------------------------------------------------
def _fused_coattn_kernel(xt_ref, wq_ref, bq_ref, wk_ref, bk_ref,
                         wv_ref, bv_ref, wo_ref, bo_ref, out_ref,
                         *, n_heads, dk_co):
    f32 = jnp.float32
    xt = xt_ref[...]                                               # (T, CF)

    # Lane-dense projections (N = C*F); 1/sqrt(dk_co) is already folded into Q.
    q_all = jnp.dot(xt, wq_ref[...], preferred_element_type=f32) + bq_ref[...]
    k_all = jnp.dot(xt, wk_ref[...], preferred_element_type=f32) + bk_ref[...]
    v_all = jnp.dot(xt, wv_ref[...], preferred_element_type=f32) + bv_ref[...]

    acc = jnp.zeros(out_ref.shape, f32)
    for hh in range(n_heads):                                      # static unroll (h is small)
        lo = hh * dk_co
        hi = lo + dk_co
        q_h = q_all[:, lo:hi]                                      # (T, dk_co)
        k_h = k_all[:, lo:hi]
        v_h = v_all[:, lo:hi]

        scores = jax.lax.dot_general(                              # (T, T)
            q_h, k_h, (((1,), (1,)), ((), ())), preferred_element_type=f32)
        m = jnp.max(scores, axis=-1, keepdims=True)
        e = jnp.exp(scores - m)
        att = e * pl.reciprocal(jnp.sum(e, axis=-1, keepdims=True), approx=True)
        # TODO(synk): dropout on `att` omitted (eval-mode identity; training would
        # need pltpu.prng_seed / prng_random_bits).

        pv = jnp.dot(att.astype(v_h.dtype), v_h, preferred_element_type=f32)   # (T, dk_co)
        # Per-head slice of the folded output projection; accumulate lane-dense.
        acc = acc + jnp.dot(pv, wo_ref[pl.ds(lo, dk_co), :], preferred_element_type=f32)

    out_ref[...] = (acc + bo_ref[...]).astype(out_ref.dtype)


def _fused_coattention_call(xt, fp, *, n_heads, dk_co):
    B, T, CF = xt.shape
    kern = functools.partial(_fused_coattn_kernel, n_heads=n_heads, dk_co=dk_co)
    w_spec = pl.BlockSpec((CF, CF), lambda b: (0, 0))
    b_spec = pl.BlockSpec((1, CF), lambda b: (0, 0))
    return pl.pallas_call(
        kern,
        out_shape=jax.ShapeDtypeStruct((B, T, CF), xt.dtype),
        grid=(B,),
        in_specs=[pl.BlockSpec((None, T, CF), lambda b: (b, 0, 0)),
                  w_spec, b_spec, w_spec, b_spec, w_spec, b_spec, w_spec, b_spec],
        out_specs=pl.BlockSpec((None, T, CF), lambda b: (b, 0, 0)),
        compiler_params=pltpu.CompilerParams(
            dimension_semantics=("parallel",),
            vmem_limit_bytes=32 * 1024 * 1024,
        ),
    )(xt, fp["wq"], fp["bq"], fp["wk"], fp["bk"],
      fp["wv"], fp["bv"], fp["wo"], fp["bo"])


# ---------------------------------------------------------------------------
# Weight folding: bake torch's transpose/reshape layout plumbing (and the
# 1/sqrt(_d_k) scale) into block-diagonal / permuted (C*F, C*F) weights.
# Tiny (F^2-scale) work; fused/const-folded under jit.
# ---------------------------------------------------------------------------
def _fold_params(params, *, h, C, F):
    d_k = F // h
    dk_co = d_k * C
    scale = 1.0 / math.sqrt(dk_co)
    eye_c = jnp.eye(C, dtype=params["wq"].dtype)

    # Q/K: q_all[t, c*F + f] = sum_fx xt[t, c*F + fx] * Wq[f, fx]  -> kron(I_C, Wq^T)
    wq_big = jnp.kron(eye_c, params["wq"].T) * scale
    bq_big = (jnp.tile(params["bq"], C) * scale)[None, :]
    wk_big = jnp.kron(eye_c, params["wk"].T)
    bk_big = jnp.tile(params["bk"], C)[None, :]

    # V: columns reordered to (head, channel, d_k) so each head's V is contiguous.
    wv3 = params["wv"].reshape(h, d_k, F)                 # [hh, d, f_in]
    wv_big = jnp.einsum("ab,hdf->afhbd", eye_c, wv3).reshape(C * F, C * F)
    bv_big = jnp.broadcast_to(params["bv"].reshape(h, 1, d_k), (h, C, d_k)).reshape(1, C * F)

    # O: rows ordered (head, channel, d_k), columns in (channel, F_out) layout.
    wo3 = params["wo"].reshape(F, h, d_k)                 # [f_out, hh, d]
    wo_big = jnp.einsum("ab,fhd->hadbf", eye_c, wo3).reshape(C * F, C * F)
    bo_big = jnp.tile(params["bo"], C)[None, :]

    return dict(wq=wq_big, bq=bq_big, wk=wk_big, bk=bk_big,
                wv=wv_big, bv=bv_big, wo=wo_big, bo=bo_big)


# ---------------------------------------------------------------------------
# Full forward (4-D branch of MultiHeadCoAttention), eval mode
# ---------------------------------------------------------------------------
def multihead_coattention(x, params, h):
    B, C, T, F = x.shape
    d_k = F // h
    dk_co = d_k * C
    fp = _fold_params(params, h=h, C=C, F=F)
    # Single cheap layout op on the input: (B, C, T, F) -> (B, T, C*F) (lane-dense).
    xt = jnp.transpose(x, (0, 2, 1, 3)).reshape(B, T, C * F)
    out_t = _fused_coattention_call(xt, fp, n_heads=h, dk_co=dk_co)   # (B, T, C*F)
    return jnp.transpose(out_t.reshape(B, T, C, F), (0, 2, 1, 3))     # (B, C, T, F)


# ---------------------------------------------------------------------------
# Pure-JAX reference (mirrors the PyTorch 4-D branch line-by-line, eval mode)
# ---------------------------------------------------------------------------
def multihead_coattention_ref(x, params, h):
    B, C, T, F = x.shape
    d_k = F // h
    dk_co = d_k * C
    qp = x @ params["wq"].T + params["bq"]
    kp = x @ params["wk"].T + params["bk"]
    vp = x @ params["wv"].T + params["bv"]
    q = jnp.transpose(qp, (0, 2, 1, 3)).reshape(B, -1, h, dk_co)
    k = jnp.transpose(kp, (0, 2, 1, 3)).reshape(B, -1, h, dk_co)
    v = vp.reshape(B, C, -1, h, d_k)
    scores = jnp.matmul(
        jnp.transpose(q, (0, 2, 1, 3)), jnp.transpose(k, (0, 2, 3, 1))
    ) / math.sqrt(dk_co)
    att = jax.nn.softmax(scores, axis=3)
    p_att = jnp.broadcast_to(att[:, None], (B, C, h, att.shape[-2], att.shape[-1]))
    o = jnp.matmul(p_att, jnp.swapaxes(v, -3, -2))        # (B, C, h, T, d_k)
    o = jnp.swapaxes(o, -3, -2).reshape(B, C, -1, h * d_k)
    return o @ params["wo"].T + params["bo"]


# ---------------------------------------------------------------------------
if __name__ == "__main__":
    B, C, T, F, H = 2, 4, 8, 32, 4   # n_units=32, h=4 -> d_k=8, _d_k=C*d_k=32, C*F=128

    key = jax.random.PRNGKey(0)
    ks = jax.random.split(key, 9)
    params = {
        "wq": jax.random.normal(ks[0], (F, F), jnp.float32) * 0.1,
        "bq": jax.random.normal(ks[1], (F,), jnp.float32) * 0.1,
        "wk": jax.random.normal(ks[2], (F, F), jnp.float32) * 0.1,
        "bk": jax.random.normal(ks[3], (F,), jnp.float32) * 0.1,
        "wv": jax.random.normal(ks[4], (F, F), jnp.float32) * 0.1,
        "bv": jax.random.normal(ks[5], (F,), jnp.float32) * 0.1,
        "wo": jax.random.normal(ks[6], (F, F), jnp.float32) * 0.1,
        "bo": jax.random.normal(ks[7], (F,), jnp.float32) * 0.1,
    }
    x = jax.random.normal(ks[8], (B, C, T, F), jnp.float32)

    fwd = jax.jit(multihead_coattention, static_argnames="h")
    out = jax.block_until_ready(fwd(x, params, h=H))

    ref = multihead_coattention_ref(x, params, H)
    assert out.shape == (B, C, T, F)
    assert jnp.allclose(out, ref, atol=2e-3, rtol=2e-3), "mismatch vs reference"

    print("KERNEL_OK")
</pallas_src>

<mosaic_0001>
module attributes {stable_mosaic.version = 11 : i64} {
  func.func @_fused_coattn_kernel(%arg0: i32, %arg1: memref<1x8x128xf32, #tpu.memory_space<vmem>>, %arg2: memref<128x128xf32, #tpu.memory_space<vmem>>, %arg3: memref<1x128xf32, #tpu.memory_space<vmem>>, %arg4: memref<128x128xf32, #tpu.memory_space<vmem>>, %arg5: memref<1x128xf32, #tpu.memory_space<vmem>>, %arg6: memref<128x128xf32, #tpu.memory_space<vmem>>, %arg7: memref<1x128xf32, #tpu.memory_space<vmem>>, %arg8: memref<128x128xf32, #tpu.memory_space<vmem>>, %arg9: memref<1x128xf32, #tpu.memory_space<vmem>>, %arg10: memref<1x8x128xf32, #tpu.memory_space<vmem>>) attributes {dimension_semantics = [#tpu.dimension_semantics<parallel>], iteration_bounds = array<i64: 2>, scalar_prefetch = 0 : i64, scratch_operands = 0 : i64, tpu.core_type = #tpu.core_type<tc>, window_params = [{transform_indices = @transform_0, window_bounds = array<i64: 1, 8, 128>}, {pipeline_mode = #tpu.pipeline_mode<synchronous>, transform_indices = @transform_1, window_bounds = array<i64: 128, 128>}, {pipeline_mode = #tpu.pipeline_mode<synchronous>, transform_indices = @transform_2, window_bounds = array<i64: 1, 128>}, {pipeline_mode = #tpu.pipeline_mode<synchronous>, transform_indices = @transform_3, window_bounds = array<i64: 128, 128>}, {pipeline_mode = #tpu.pipeline_mode<synchronous>, transform_indices = @transform_4, window_bounds = array<i64: 1, 128>}, {pipeline_mode = #tpu.pipeline_mode<synchronous>, transform_indices = @transform_5, window_bounds = array<i64: 128, 128>}, {pipeline_mode = #tpu.pipeline_mode<synchronous>, transform_indices = @transform_6, window_bounds = array<i64: 1, 128>}, {pipeline_mode = #tpu.pipeline_mode<synchronous>, transform_indices = @transform_7, window_bounds = array<i64: 128, 128>}, {pipeline_mode = #tpu.pipeline_mode<synchronous>, transform_indices = @transform_8, window_bounds = array<i64: 1, 128>}, {transform_indices = @transform_9, window_bounds = array<i64: 1, 8, 128>}]} {
    %c0 = arith.constant 0 : index
    %c0_0 = arith.constant 0 : index
    %c0_1 = arith.constant 0 : index
    %0 = vector.load %arg1[%c0, %c0_0, %c0_1] : memref<1x8x128xf32, #tpu.memory_space<vmem>>, vector<1x8x128xf32>
    %1 = vector.shape_cast %0 : vector<1x8x128xf32> to vector<8x128xf32>
    %c0_2 = arith.constant 0 : index
    %c0_3 = arith.constant 0 : index
    %2 = vector.load %arg2[%c0_2, %c0_3] : memref<128x128xf32, #tpu.memory_space<vmem>>, vector<128x128xf32>
    %cst = arith.constant dense<0.000000e+00> : vector<8x128xf32>
    %3 = tpu.matmul %1, %2, %cst {dimension_numbers = #tpu.dot_dimension_numbers<[1], [0], [0], [1], [0, 0, 1, 1], [], []>} : vector<8x128xf32>, vector<128x128xf32>, vector<8x128xf32> -> vector<8x128xf32>
    %c0_4 = arith.constant 0 : index
    %c0_5 = arith.constant 0 : index
    %4 = vector.load %arg3[%c0_4, %c0_5] : memref<1x128xf32, #tpu.memory_space<vmem>>, vector<1x128xf32>
    %5 = vector.broadcast %4 : vector<1x128xf32> to vector<8x128xf32>
    %6 = arith.addf %3, %5 : vector<8x128xf32>
    %c0_6 = arith.constant 0 : index
    %c0_7 = arith.constant 0 : index
    %7 = vector.load %arg4[%c0_6, %c0_7] : memref<128x128xf32, #tpu.memory_space<vmem>>, vector<128x128xf32>
    %cst_8 = arith.constant dense<0.000000e+00> : vector<8x128xf32>
    %8 = tpu.matmul %1, %7, %cst_8 {dimension_numbers = #tpu.dot_dimension_numbers<[1], [0], [0], [1], [0, 0, 1, 1], [], []>} : vector<8x128xf32>, vector<128x128xf32>, vector<8x128xf32> -> vector<8x128xf32>
    %c0_9 = arith.constant 0 : index
    %c0_10 = arith.constant 0 : index
    %9 = vector.load %arg5[%c0_9, %c0_10] : memref<1x128xf32, #tpu.memory_space<vmem>>, vector<1x128xf32>
    %10 = vector.broadcast %9 : vector<1x128xf32> to vector<8x128xf32>
    %11 = arith.addf %8, %10 : vector<8x128xf32>
    %c0_11 = arith.constant 0 : index
    %c0_12 = arith.constant 0 : index
    %12 = vector.load %arg6[%c0_11, %c0_12] : memref<128x128xf32, #tpu.memory_space<vmem>>, vector<128x128xf32>
    %cst_13 = arith.constant dense<0.000000e+00> : vector<8x128xf32>
    %13 = tpu.matmul %1, %12, %cst_13 {dimension_numbers = #tpu.dot_dimension_numbers<[1], [0], [0], [1], [0, 0, 1, 1], [], []>} : vector<8x128xf32>, vector<128x128xf32>, vector<8x128xf32> -> vector<8x128xf32>
    %c0_14 = arith.constant 0 : index
    %c0_15 = arith.constant 0 : index
    %14 = vector.load %arg7[%c0_14, %c0_15] : memref<1x128xf32, #tpu.memory_space<vmem>>, vector<1x128xf32>
    %15 = vector.broadcast %14 : vector<1x128xf32> to vector<8x128xf32>
    %16 = arith.addf %13, %15 : vector<8x128xf32>
    %cst_16 = arith.constant 0.000000e+00 : f32
    %17 = vector.broadcast %cst_16 : f32 to vector<8x128xf32>
    %18 = vector.extract_strided_slice %6 {offsets = [0, 0], sizes = [8, 32], strides = [1, 1]} : vector<8x128xf32> to vector<8x32xf32>
    %19 = vector.extract_strided_slice %11 {offsets = [0, 0], sizes = [8, 32], strides = [1, 1]} : vector<8x128xf32> to vector<8x32xf32>
    %20 = vector.extract_strided_slice %16 {offsets = [0, 0], sizes = [8, 32], strides = [1, 1]} : vector<8x128xf32> to vector<8x32xf32>
    %cst_17 = arith.constant dense<0.000000e+00> : vector<8x8xf32>
    %21 = tpu.matmul %18, %19, %cst_17 {dimension_numbers = #tpu.dot_dimension_numbers<[1], [1], [0], [0], [0, 0, 1, 0], [], []>} : vector<8x32xf32>, vector<8x32xf32>, vector<8x8xf32> -> vector<8x8xf32>
    %cst_18 = arith.constant dense<0xFF800000> : vector<8xf32>
    %22 = vector.multi_reduction <maximumf>, %21, %cst_18 [1] : vector<8x8xf32> to vector<8xf32>
    %23 = vector.shape_cast %22 : vector<8xf32> to vector<8x1xf32>
    %24 = vector.broadcast %23 : vector<8x1xf32> to vector<8x8xf32>
    %25 = arith.subf %21, %24 : vector<8x8xf32>
    %26 = math.exp %25 : vector<8x8xf32>
    %cst_19 = arith.constant dense<0.000000e+00> : vector<8xf32>
    %27 = vector.multi_reduction <add>, %26, %cst_19 [1] : vector<8x8xf32> to vector<8xf32>
    %28 = vector.shape_cast %27 : vector<8xf32> to vector<8x1xf32>
    %29 = tpu.reciprocal %28 {approx = true} : vector<8x1xf32> -> vector<8x1xf32>
    %30 = vector.broadcast %29 : vector<8x1xf32> to vector<8x8xf32>
    %31 = arith.mulf %26, %30 : vector<8x8xf32>
    %cst_20 = arith.constant dense<0.000000e+00> : vector<8x32xf32>
    %32 = tpu.matmul %31, %20, %cst_20 {dimension_numbers = #tpu.dot_dimension_numbers<[1], [0], [0], [1], [0, 0, 1, 1], [], []>} : vector<8x8xf32>, vector<8x32xf32>, vector<8x32xf32> -> vector<8x32xf32>
    %c0_21 = arith.constant 0 : index
    %c0_22 = arith.constant 0 : index
    %33 = vector.load %arg8[%c0_21, %c0_22] : memref<128x128xf32, #tpu.memory_space<vmem>>, vector<32x128xf32>
    %cst_23 = arith.constant dense<0.000000e+00> : vector<8x128xf32>
    %34 = tpu.matmul %32, %33, %cst_23 {dimension_numbers = #tpu.dot_dimension_numbers<[1], [0], [0], [1], [0, 0, 1, 1], [], []>} : vector<8x32xf32>, vector<32x128xf32>, vector<8x128xf32> -> vector<8x128xf32>
    %35 = arith.addf %17, %34 : vector<8x128xf32>
    %36 = vector.extract_strided_slice %6 {offsets = [0, 32], sizes = [8, 32], strides = [1, 1]} : vector<8x128xf32> to vector<8x32xf32>
    %37 = vector.extract_strided_slice %11 {offsets = [0, 32], sizes = [8, 32], strides = [1, 1]} : vector<8x128xf32> to vector<8x32xf32>
    %38 = vector.extract_strided_slice %16 {offsets = [0, 32], sizes = [8, 32], strides = [1, 1]} : vector<8x128xf32> to vector<8x32xf32>
    %cst_24 = arith.constant dense<0.000000e+00> : vector<8x8xf32>
    %39 = tpu.matmul %36, %37, %cst_24 {dimension_numbers = #tpu.dot_dimension_numbers<[1], [1], [0], [0], [0, 0, 1, 0], [], []>} : vector<8x32xf32>, vector<8x32xf32>, vector<8x8xf32> -> vector<8x8xf32>
    %cst_25 = arith.constant dense<0xFF800000> : vector<8xf32>
    %40 = vector.multi_reduction <maximumf>, %39, %cst_25 [1] : vector<8x8xf32> to vector<8xf32>
    %41 = vector.shape_cast %40 : vector<8xf32> to vector<8x1xf32>
    %42 = vector.broadcast %41 : vector<8x1xf32> to vector<8x8xf32>
    %43 = arith.subf %39, %42 : vector<8x8xf32>
    %44 = math.exp %43 : vector<8x8xf32>
    %cst_26 = arith.constant dense<0.000000e+00> : vector<8xf32>
    %45 = vector.multi_reduction <add>, %44, %cst_26 [1] : vector<8x8xf32> to vector<8xf32>
    %46 = vector.shape_cast %45 : vector<8xf32> to vector<8x1xf32>
    %47 = tpu.reciprocal %46 {approx = true} : vector<8x1xf32> -> vector<8x1xf32>
    %48 = vector.broadcast %47 : vector<8x1xf32> to vector<8x8xf32>
    %49 = arith.mulf %44, %48 : vector<8x8xf32>
    %cst_27 = arith.constant dense<0.000000e+00> : vector<8x32xf32>
    %50 = tpu.matmul %49, %38, %cst_27 {dimension_numbers = #tpu.dot_dimension_numbers<[1], [0], [0], [1], [0, 0, 1, 1], [], []>} : vector<8x8xf32>, vector<8x32xf32>, vector<8x32xf32> -> vector<8x32xf32>
    %c32 = arith.constant 32 : index
    %c0_28 = arith.constant 0 : index
    %51 = vector.load %arg8[%c32, %c0_28] : memref<128x128xf32, #tpu.memory_space<vmem>>, vector<32x128xf32>
    %cst_29 = arith.constant dense<0.000000e+00> : vector<8x128xf32>
    %52 = tpu.matmul %50, %51, %cst_29 {dimension_numbers = #tpu.dot_dimension_numbers<[1], [0], [0], [1], [0, 0, 1, 1], [], []>} : vector<8x32xf32>, vector<32x128xf32>, vector<8x128xf32> -> vector<8x128xf32>
    %53 = arith.addf %35, %52 : vector<8x128xf32>
    %54 = vector.extract_strided_slice %6 {offsets = [0, 64], sizes = [8, 32], strides = [1, 1]} : vector<8x128xf32> to vector<8x32xf32>
    %55 = vector.extract_strided_slice %11 {offsets = [0, 64], sizes = [8, 32], strides = [1, 1]} : vector<8x128xf32> to vector<8x32xf32>
    %56 = vector.extract_strided_slice %16 {offsets = [0, 64], sizes = [8, 32], strides = [1, 1]} : vector<8x128xf32> to vector<8x32xf32>
    %cst_30 = arith.constant dense<0.000000e+00> : vector<8x8xf32>
    %57 = tpu.matmul %54, %55, %cst_30 {dimension_numbers = #tpu.dot_dimension_numbers<[1], [1], [0], [0], [0, 0, 1, 0], [], []>} : vector<8x32xf32>, vector<8x32xf32>, vector<8x8xf32> -> vector<8x8xf32>
    %cst_31 = arith.constant dense<0xFF800000> : vector<8xf32>
    %58 = vector.multi_reduction <maximumf>, %57, %cst_31 [1] : vector<8x8xf32> to vector<8xf32>
    %59 = vector.shape_cast %58 : vector<8xf32> to vector<8x1xf32>
    %60 = vector.broadcast %59 : vector<8x1xf32> to vector<8x8xf32>
    %61 = arith.subf %57, %60 : vector<8x8xf32>
    %62 = math.exp %61 : vector<8x8xf32>
    %cst_32 = arith.constant dense<0.000000e+00> : vector<8xf32>
    %63 = vector.multi_reduction <add>, %62, %cst_32 [1] : vector<8x8xf32> to vector<8xf32>
    %64 = vector.shape_cast %63 : vector<8xf32> to vector<8x1xf32>
    %65 = tpu.reciprocal %64 {approx = true} : vector<8x1xf32> -> vector<8x1xf32>
    %66 = vector.broadcast %65 : vector<8x1xf32> to vector<8x8xf32>
    %67 = arith.mulf %62, %66 : vector<8x8xf32>
    %cst_33 = arith.constant dense<0.000000e+00> : vector<8x32xf32>
    %68 = tpu.matmul %67, %56, %cst_33 {dimension_numbers = #tpu.dot_dimension_numbers<[1], [0], [0], [1], [0, 0, 1, 1], [], []>} : vector<8x8xf32>, vector<8x32xf32>, vector<8x32xf32> -> vector<8x32xf32>
    %c64 = arith.constant 64 : index
    %c0_34 = arith.constant 0 : index
    %69 = vector.load %arg8[%c64, %c0_34] : memref<128x128xf32, #tpu.memory_space<vmem>>, vector<32x128xf32>
    %cst_35 = arith.constant dense<0.000000e+00> : vector<8x128xf32>
    %70 = tpu.matmul %68, %69, %cst_35 {dimension_numbers = #tpu.dot_dimension_numbers<[1], [0], [0], [1], [0, 0, 1, 1], [], []>} : vector<8x32xf32>, vector<32x128xf32>, vector<8x128xf32> -> vector<8x128xf32>
    %71 = arith.addf %53, %70 : vector<8x128xf32>
    %72 = vector.extract_strided_slice %6 {offsets = [0, 96], sizes = [8, 32], strides = [1, 1]} : vector<8x128xf32> to vector<8x32xf32>
    %73 = vector.extract_strided_slice %11 {offsets = [0, 96], sizes = [8, 32], strides = [1, 1]} : vector<8x128xf32> to vector<8x32xf32>
    %74 = vector.extract_strided_slice %16 {offsets = [0, 96], sizes = [8, 32], strides = [1, 1]} : vector<8x128xf32> to vector<8x32xf32>
    %cst_36 = arith.constant dense<0.000000e+00> : vector<8x8xf32>
    %75 = tpu.matmul %72, %73, %cst_36 {dimension_numbers = #tpu.dot_dimension_numbers<[1], [1], [0], [0], [0, 0, 1, 0], [], []>} : vector<8x32xf32>, vector<8x32xf32>, vector<8x8xf32> -> vector<8x8xf32>
    %cst_37 = arith.constant dense<0xFF800000> : vector<8xf32>
    %76 = vector.multi_reduction <maximumf>, %75, %cst_37 [1] : vector<8x8xf32> to vector<8xf32>
    %77 = vector.shape_cast %76 : vector<8xf32> to vector<8x1xf32>
    %78 = vector.broadcast %77 : vector<8x1xf32> to vector<8x8xf32>
    %79 = arith.subf %75, %78 : vector<8x8xf32>
    %80 = math.exp %79 : vector<8x8xf32>
    %cst_38 = arith.constant dense<0.000000e+00> : vector<8xf32>
    %81 = vector.multi_reduction <add>, %80, %cst_38 [1] : vector<8x8xf32> to vector<8xf32>
    %82 = vector.shape_cast %81 : vector<8xf32> to vector<8x1xf32>
    %83 = tpu.reciprocal %82 {approx = true} : vector<8x1xf32> -> vector<8x1xf32>
    %84 = vector.broadcast %83 : vector<8x1xf32> to vector<8x8xf32>
    %85 = arith.mulf %80, %84 : vector<8x8xf32>
    %cst_39 = arith.constant dense<0.000000e+00> : vector<8x32xf32>
    %86 = tpu.matmul %85, %74, %cst_39 {dimension_numbers = #tpu.dot_dimension_numbers<[1], [0], [0], [1], [0, 0, 1, 1], [], []>} : vector<8x8xf32>, vector<8x32xf32>, vector<8x32xf32> -> vector<8x32xf32>
    %c96 = arith.constant 96 : index
    %c0_40 = arith.constant 0 : index
    %87 = vector.load %arg8[%c96, %c0_40] : memref<128x128xf32, #tpu.memory_space<vmem>>, vector<32x128xf32>
    %cst_41 = arith.constant dense<0.000000e+00> : vector<8x128xf32>
    %88 = tpu.matmul %86, %87, %cst_41 {dimension_numbers = #tpu.dot_dimension_numbers<[1], [0], [0], [1], [0, 0, 1, 1], [], []>} : vector<8x32xf32>, vector<32x128xf32>, vector<8x128xf32> -> vector<8x128xf32>
    %89 = arith.addf %71, %88 : vector<8x128xf32>
    %c0_42 = arith.constant 0 : index
    %c0_43 = arith.constant 0 : index
    %90 = vector.load %arg9[%c0_42, %c0_43] : memref<1x128xf32, #tpu.memory_space<vmem>>, vector<1x128xf32>
    %91 = vector.broadcast %90 : vector<1x128xf32> to vector<8x128xf32>
    %92 = arith.addf %89, %91 : vector<8x128xf32>
    %c0_44 = arith.constant 0 : index
    %c0_45 = arith.constant 0 : index
    %c0_46 = arith.constant 0 : index
    %93 = vector.load %arg10[%c0_44, %c0_45, %c0_46] : memref<1x8x128xf32, #tpu.memory_space<vmem>>, vector<1x8x128xf32>
    %94 = vector.shape_cast %93 : vector<1x8x128xf32> to vector<8x128xf32>
    %95 = vector.shape_cast %92 : vector<8x128xf32> to vector<1x8x128xf32>
    tpu.vector_store %arg10[%c0_44, %c0_45, %c0_46], %95 {strides = array<i32>} : memref<1x8x128xf32, #tpu.memory_space<vmem>>, vector<1x8x128xf32>,
    return
  }
  func.func @transform_0(%arg0: i32) -> (i32, i32, i32) {
    %c0_i32 = arith.constant 0 : i32
    %c0_i32_0 = arith.constant 0 : i32
    %c0_i32_1 = arith.constant 0 : i32
    return %arg0, %c0_i32, %c0_i32_0 : i32, i32, i32
  }
  func.func @transform_1(%arg0: i32) -> (i32, i32) {
    %c0_i32 = arith.constant 0 : i32
    %c0_i32_0 = arith.constant 0 : i32
    %c0_i32_1 = arith.constant 0 : i32
    return %c0_i32, %c0_i32_0 : i32, i32
  }
  func.func @transform_2(%arg0: i32) -> (i32, i32) {
    %c0_i32 = arith.constant 0 : i32
    %c0_i32_0 = arith.constant 0 : i32
    %c0_i32_1 = arith.constant 0 : i32
    return %c0_i32, %c0_i32_0 : i32, i32
  }
  func.func @transform_3(%arg0: i32) -> (i32, i32) {
    %c0_i32 = arith.constant 0 : i32
    %c0_i32_0 = arith.constant 0 : i32
    %c0_i32_1 = arith.constant 0 : i32
    return %c0_i32, %c0_i32_0 : i32, i32
  }
  func.func @transform_4(%arg0: i32) -> (i32, i32) {
    %c0_i32 = arith.constant 0 : i32
    %c0_i32_0 = arith.constant 0 : i32
    %c0_i32_1 = arith.constant 0 : i32
    return %c0_i32, %c0_i32_0 : i32, i32
  }
  func.func @transform_5(%arg0: i32) -> (i32, i32) {
    %c0_i32 = arith.constant 0 : i32
    %c0_i32_0 = arith.constant 0 : i32
    %c0_i32_1 = arith.constant 0 : i32
    return %c0_i32, %c0_i32_0 : i32, i32
  }
  func.func @transform_6(%arg0: i32) -> (i32, i32) {
    %c0_i32 = arith.constant 0 : i32
    %c0_i32_0 = arith.constant 0 : i32
    %c0_i32_1 = arith.constant 0 : i32
    return %c0_i32, %c0_i32_0 : i32, i32
  }
  func.func @transform_7(%arg0: i32) -> (i32, i32) {
    %c0_i32 = arith.constant 0 : i32
    %c0_i32_0 = arith.constant 0 : i32
    %c0_i32_1 = arith.constant 0 : i32
    return %c0_i32, %c0_i32_0 : i32, i32
  }
  func.func @transform_8(%arg0: i32) -> (i32, i32) {
    %c0_i32 = arith.constant 0 : i32
    %c0_i32_0 = arith.constant 0 : i32
    %c0_i32_1 = arith.constant 0 : i32
    return %c0_i32, %c0_i32_0 : i32, i32
  }
  func.func @transform_9(%arg0: i32) -> (i32, i32, i32) {
    %c0_i32 = arith.constant 0 : i32
    %c0_i32_0 = arith.constant 0 : i32
    %c0_i32_1 = arith.constant 0 : i32
    return %arg0, %c0_i32, %c0_i32_0 : i32, i32, i32
  }
}

</mosaic_0001>

<bundles_post_ra>
// kernel: multihead_coattention.1
= control target key start
LH: loop header
LB: loop body
LE: loop exit
PB: predicated region body
PF: predicated region fallthrough
CT: control target
= control target key end

     0   :  { %s993_s30 = smov 0   ;;  %s1264_s0 = inlined_call_operand.vmem [shape: f32[2,8,128], index: 0, kind: input, shape index: {}]   ;;  %s1265_s1 = inlined_call_operand.vmem [shape: f32[128,128], index: 1, kind: input, shape index: {}]   ;;  %s1266_s2 = inlined_call_operand.vmem [shape: f32[1,128], index: 2, kind: input, shape index: {}]   ;;  %s1267_s3 = inlined_call_operand.vmem [shape: f32[128,128], index: 3, kind: input, shape index: {}]   ;;  %s1268_s4 = inlined_call_operand.vmem [shape: f32[1,128], index: 4, kind: input, shape index: {}]   ;;  %s1269_s5 = inlined_call_operand.vmem [shape: f32[128,128], index: 5, kind: input, shape index: {}]   ;;  %s1270_s6 = inlined_call_operand.vmem [shape: f32[1,128], index: 6, kind: input, shape index: {}]   ;;  %s1271_s7 = inlined_call_operand.vmem [shape: f32[128,128], index: 7, kind: input, shape index: {}]   ;;  %s1272_s8 = inlined_call_operand.vmem [shape: f32[1,128], index: 8, kind: input, shape index: {}]   ;;  %s1273_s9 = inlined_call_operand.vmem [shape: f32[2,8,128], index: 9, kind: output, shape index: {}]  }
   0x1 LB: > { %s876_s10 = sadd.s32 4294967295, %s938_s30   ;;  %p880_p0 = scmp.ge.s32.totalorder %s938_s30, 1  ;;  %s938_s30 = sphi %s993_s30, %s19_s30  }
   0x2   : > { %p286_p1 = scmp.lt.s32.totalorder %s938_s30, 3 }
   0x4   : > { %p287_p2 = pnand %p880_p0, %p286_p1 }
   0x5   : > { %p320_p3 = scmp.lt.s32.totalorder (!%p287_p2), %s876_s10, 1  ;;  %s940_s22 = smov (!%p287_p2), 64  }
   0x6   : > { %290 = sbr.rel (%p287_p2) target bundleno = 1344 (0x540), region = 56  ;;  %s941_s23 = smov (!%p287_p2), 96  }
   0x7   : > { %s942_s24 = smov (!%p287_p2), 32  }
   0xb   : > { %v384_v0 = vld [vmem:[%s1267_s3 + $0x78] sm:$0xff]  ;;  %v383_v1 = vld [vmem:[%s1267_s3 + $0x70] sm:$0xff]  ;;  %v382_v4 = vld [vmem:[%s1267_s3 + $0x68] sm:$0xff]  ;;  %s1275_s10 = smov (!%p320_p3, %s876_s10), 1  ;;  %vm449_vm0 = vcmask 261120   ;;  %vm476_vm1 = vcmask 64512  }
   0xc   : > { %v344_v2 = vld [vmem:[%s1265_s1 + $0x78] sm:$0xff]  ;;  %389 = vmatpush.msra.mxu1 %v384_v0  ;;  %v343_v3 = vld [vmem:[%s1265_s1 + $0x70] sm:$0xff]  ;;  %v342_v5 = vld [vmem:[%s1265_s1 + $0x68] sm:$0xff]  ;;  %s881_s20 = sshll.u32 %s1275_s10, 3 }
   0xd   : > { %349 = vmatpush.msra.mxu0 %v344_v2  ;;  %v381_v6 = vld [vmem:[%s1267_s3 + $0x60] sm:$0xff]  ;;  %v380_v8 = vld [vmem:[%s1267_s3 + $0x58] sm:$0xff]  ;;  %v379_v10 = vld [vmem:[%s1267_s3 + $0x50] sm:$0xff]  ;;  %s323_s16 = scalar_lea.vmem %s1264_s0, %s881_s20  ;;  %s327_s27 = scalar_lea.vmem %s1273_s9, %s881_s20 }
   0xe   : > { %390 = vmatpush.msra.mxu1 %v383_v1  ;;  %v341_v7 = vld [vmem:[%s1265_s1 + $0x60] sm:$0xff]  ;;  %v340_v9 = vld [vmem:[%s1265_s1 + $0x58] sm:$0xff]  ;;  %v339_v11 = vld [vmem:[%s1265_s1 + $0x50] sm:$0xff] }
   0xf   : > { %350 = vmatpush.msra.mxu0 %v343_v3  ;;  %v378_v12 = vld [vmem:[%s1267_s3 + $0x48] sm:$0xff]  ;;  %v424_v14 = vld [vmem:[%s1269_s5 + $0x78] sm:$0xff]  ;;  %v423_v15 = vld [vmem:[%s1269_s5 + $0x70] sm:$0xff] }
  0x10   : > { %391 = vmatpush.msra.mxu1 %v382_v4  ;;  %v338_v13 = vld [vmem:[%s1265_s1 + $0x48] sm:$0xff]  ;;  %v377_v16 = vld [vmem:[%s1267_s3 + $0x40] sm:$0xff]  ;;  %429 = vmatpush.msra.mxu2 %v424_v14  ;;  %v376_v19 = vld [vmem:[%s1267_s3 + $0x38] sm:$0xff] }
  0x11   : > { %351 = vmatpush.msra.mxu0 %v342_v5  ;;  %v337_v17 = vld [vmem:[%s1265_s1 + $0x40] sm:$0xff]  ;;  %v422_v18 = vld [vmem:[%s1269_s5 + $0x68] sm:$0xff]  ;;  %v336_v20 = vld [vmem:[%s1265_s1 + $0x38] sm:$0xff] }
  0x12   : > { %392 = vmatpush.msra.mxu1 %v381_v6  ;;  %430 = vmatpush.msra.mxu2 %v423_v15  ;;  %v375_v21 = vld [vmem:[%s1267_s3 + $0x30] sm:$0xff]  ;;  %v421_v22 = vld [vmem:[%s1269_s5 + $0x60] sm:$0xff]  ;;  %v420_v24 = vld [vmem:[%s1269_s5 + $0x58] sm:$0xff] }
  0x13   : > { %352 = vmatpush.msra.mxu0 %v341_v7  ;;  %v335_v23 = vld [vmem:[%s1265_s1 + $0x30] sm:$0xff]  ;;  %v374_v25 = vld [vmem:[%s1267_s3 + $0x28] sm:$0xff]  ;;  %v373_v28 = vld [vmem:[%s1267_s3 + $0x20] sm:$0xff] }
  0x14   : > { %393 = vmatpush.msra.mxu1 %v380_v8  ;;  %431 = vmatpush.msra.mxu2 %v422_v18  ;;  %v334_v26 = vld [vmem:[%s1265_s1 + $0x28] sm:$0xff]  ;;  %v419_v27 = vld [vmem:[%s1269_s5 + $0x50] sm:$0xff]  ;;  %v333_v29 = vld [vmem:[%s1265_s1 + $0x20] sm:$0xff] }
  0x15   : > { %353 = vmatpush.msra.mxu0 %v340_v9  ;;  %v418_v30 = vld [vmem:[%s1269_s5 + $0x48] sm:$0xff]  ;;  %v372_v31 = vld [vmem:[%s1267_s3 + $0x18] sm:$0xff]  ;;  %v417_v33 = vld [vmem:[%s1269_s5 + $0x40] sm:$0xff] }
  0x16   : > { %394 = vmatpush.msra.mxu1 %v379_v10  ;;  %432 = vmatpush.msra.mxu2 %v421_v22  ;;  %v332_v32 = vld [vmem:[%s1265_s1 + $0x18] sm:$0xff]  ;;  %v371_v34 = vld [vmem:[%s1267_s3 + $0x10] sm:$0xff]  ;;  %v370_v37 = vld [vmem:[%s1267_s3 + $0x8] sm:$0xff] }
  0x17   : > { %354 = vmatpush.msra.mxu0 %v339_v11  ;;  %v331_v35 = vld [vmem:[%s1265_s1 + $0x10] sm:$0xff]  ;;  %v416_v36 = vld [vmem:[%s1269_s5 + $0x38] sm:$0xff]  ;;  %v330_v38 = vld [vmem:[%s1265_s1 + $0x8] sm:$0xff] }
  0x18   : > { %395 = vmatpush.msra.mxu1 %v378_v12  ;;  %433 = vmatpush.msra.mxu2 %v420_v24  ;;  %v415_v39 = vld [vmem:[%s1269_s5 + $0x30] sm:$0xff]  ;;  %v369_v40 = vld [vmem:[%s1267_s3] sm:$0xff]  ;;  %v414_v43 = vld [vmem:[%s1269_s5 + $0x28] sm:$0xff] }
  0x19   : > { %355 = vmatpush.msra.mxu0 %v338_v13  ;;  %v329_v41 = vld [vmem:[%s1265_s1] sm:$0xff]  ;;  %v412_v45 = vld [vmem:[%s1269_s5 + $0x18] sm:$0xff]  ;;  %v411_v46 = vld [vmem:[%s1269_s5 + $0x10] sm:$0xff] }
  0x1a   : > { %396 = vmatpush.msra.mxu1 %v377_v16  ;;  %434 = vmatpush.msra.mxu2 %v419_v27  ;;  %v328_v42 = vld [vmem:[%s323_s16] sm:$0xff]  ;;  %v410_v47 = vld [vmem:[%s1269_s5 + $0x8] sm:$0xff]  ;;  %v514_v6 = vld [vmem:[%s1271_s7 + $0x18] sm:$0xff] }
  0x1b   : > { %356 = vmatpush.msra.mxu0 %v337_v17  ;;  %v413_v44 = vld [vmem:[%s1269_s5 + $0x20] sm:$0xff]  ;;  %v513_v7 = vld [vmem:[%s1271_s7 + $0x10] sm:$0xff]  ;;  %v512_v8 = vld [vmem:[%s1271_s7 + $0x8] sm:$0xff] }
  0x1c   : > { %397 = vmatpush.msra.mxu1 %v376_v19  ;;  %435 = vmatpush.msra.mxu2 %v418_v30  ;;  %v409_v48 = vld [vmem:[%s1269_s5] sm:$0xff] }
  0x1d   : > { %357 = vmatpush.msra.mxu0 %v336_v20  ;;  %v912_v49 = vld [vmem:[%s1268_s4] ss:$0 sm:$0xff] }
  0x1e   : > { %398 = vmatpush.msra.mxu1 %v375_v21  ;;  %436 = vmatpush.msra.mxu2 %v417_v33  ;;  %v913_v50 = vld [vmem:[%s1266_s2] ss:$0 sm:$0xff] }
  0x1f   : > { %358 = vmatpush.msra.mxu0 %v335_v23  ;;  %v914_v55 = vld [vmem:[%s1270_s6] ss:$0 sm:$0xff] }
  0x20   : > { %399 = vmatpush.msra.mxu1 %v374_v25  ;;  %437 = vmatpush.msra.mxu2 %v416_v36  ;;  %v511_v10 = vld [vmem:[%s1271_s7] sm:$0xff] }
  0x21   : > { %359 = vmatpush.msra.mxu0 %v334_v26 }
  0x22   : > { %400 = vmatpush.msra.mxu1 %v373_v28  ;;  %438 = vmatpush.msra.mxu2 %v415_v39 }
  0x23   : > { %360 = vmatpush.msra.mxu0 %v333_v29 }
  0x24   : > { %401 = vmatpush.msra.mxu1 %v372_v31  ;;  %439 = vmatpush.msra.mxu2 %v414_v43 }
  0x25   : > { %361 = vmatpush.msra.mxu0 %v332_v32 }
  0x26   : > { %402 = vmatpush.msra.mxu1 %v371_v34  ;;  %440 = vmatpush.msra.mxu2 %v413_v44 }
  0x27   : > { %362 = vmatpush.msra.mxu0 %v331_v35 }
  0x28   : > { %403 = vmatpush.msra.mxu1 %v370_v37  ;;  %441 = vmatpush.msra.mxu2 %v412_v45  ;;  %v584_v45 = vld [vmem:[%s1271_s7 + $0x38] sm:$0xff] }
  0x29   : > { %363 = vmatpush.msra.mxu0 %v330_v38 }
  0x2a   : > { %404 = vmatpush.msra.mxu1 %v369_v40  ;;  %442 = vmatpush.msra.mxu2 %v411_v46  ;;  %v583_v46 = vld [vmem:[%s1271_s7 + $0x30] sm:$0xff] }
  0x2b   : > { %364 = vmatpush.msra.mxu0 %v329_v41  ;;  %405 = vmatmul.f32.vlgmr.msra.gmra.mxu1 %v328_v42 }
  0x2c   : > { %365 = vmatmul.f32.vlgmr.msra.gmra.mxu0 %v328_v42  ;;  %443 = vmatpush.msra.mxu2 %v410_v47  ;;  %v582_v47 = vld [vmem:[%s1271_s7 + $0x28] sm:$0xff] }
  0x2d   : > { %623 = vmatpush.msrb.mxu0 %v514_v6 }
  0x2e   : > { %444 = vmatpush.msra.mxu2 %v409_v48  ;;  %v581_v48 = vld [vmem:[%s1271_s7 + $0x20] sm:$0xff] }
  0x2f   : > { %445 = vmatmul.f32.vlgmr.msra.gmra.mxu2 %v328_v42  ;;  %624 = vmatpush.msrb.mxu0 %v513_v7 }
  0x31   : > { %625 = vmatpush.msrb.mxu0 %v512_v8 }
  0x33   : > { %626 = vmatpush.msrb.mxu0 %v511_v10 }
  0xa8   : > { %v406_v51 = vpop.f32.mrf.mxu1 }
  0xa9   : > { %v366_v52 = vpop.f32.mrf.mxu0  ;;  %v407_v53 = vadd.f32 %v912_v49, %v406_v51  ;;  %v699_v49 = vld [vmem:[%s1271_s7 + $0x58] sm:$0xff]  ;;  %v697_v51 = vld [vmem:[%s1271_s7 + $0x48] sm:$0xff] }
  0xaa   : > { %v367_v54 = vadd.f32 %v913_v50, %v366_v52  ;;  %v698_v50 = vld [vmem:[%s1271_s7 + $0x50] sm:$0xff]  ;;  %v696_v52 = vld [vmem:[%s1271_s7 + $0x40] sm:$0xff] }
  0xab   : > { %633 = vrot.lane.b32.xlu2 %v407_v53, %s940_s22  ;;  %517 = vrot.lane.b32.xlu1 %v407_v53, %s941_s23 }
  0xac   : > { %883 = vmatpush.xpose.msk.msra.mxu3 %vm449_vm0, %v407_v53 }
  0xaf   : > { %884 = vmatmul.msk.f32.vlgmr.msra.gmra.mxu3 %vm449_vm0, %v367_v54 }
  0xb2   : > { %v446_v56 = vpop.f32.mrf.mxu2 }
  0xb3   : > { %631 = vrot.lane.b32.xlu2 %v367_v54, %s940_s22  ;;  %515 = vrot.lane.b32.xlu1 %v367_v54, %s941_s23  ;;  %v1171_v57 = vadd.f32 %v914_v55, %v446_v56  ;;  %v790_v55 = vld [vmem:[%s1271_s7 + $0x68] sm:$0xff] }
  0xb5   : > { %506 = vmatpush.msrb.mxu3 %v1171_v57 }
  0xbb   : > { %724 = vrot.lane.b32.xlu1 %v367_v54, %s942_s24  ;;  %v791_v54 = vld [vmem:[%s1271_s7 + $0x70] sm:$0xff] }
 0x105   : > { %v634_v58 = vpop.permute.xlu2 %633 }
 0x106   : > { %891 = vmatpush.xpose.msk.msrb.mxu1 %vm449_vm0, %v634_v58 }
 0x10d   : > { %v632_v59 = vpop.permute.xlu2 %631 }
 0x10e   : > { %892 = vmatmul.msk.f32.vlgmr.msrb.gmra.mxu1 %vm449_vm0, %v632_v59 }
 0x11d   : > { %v518_v60 = vpop.permute.xlu1 %517 }
 0x11e   : > { %886 = vmatpush.xpose.msk.msra.mxu3 %vm449_vm0, %v518_v60 }
 0x125   : > { %v516_v9 = vpop.permute.xlu1 %515 }
 0x12d   : > { %v725_v11 = vpop.permute.xlu1 %724 }
 0x132   : > { %v473_v61 = vpop.f32.mrf.mxu3 }
 0x133   : > { %v477_v62 = vsel %vm476_vm1, %v473_v61, -inf }
 0x134   : > { %478 = vmax.xlane.f32.xlu0 %v477_v62  ;;  %v789_v62 = vld [vmem:[%s1271_s7 + $0x60] sm:$0xff] }
 0x18b   : > { %v656_v63 = vpop.f32.mrf.mxu1 }
 0x18c   : > { %v659_v0 = vsel %vm476_vm1, %v656_v63, -inf }
 0x18d   : > { %660 = vmax.xlane.f32.xlu1 %v659_v0 }
 0x1a6   : > { %555 = vrot.lane.b32.xlu1 %v1171_v57, %s941_s23 }
 0x1a7   : > { %v479_v1 = vpop.xlane.xlu0 %478 }
 0x1a8   : > { %v480_v2 = vsub.f32 %v473_v61, %v479_v1 }
 0x1aa   : > { %v481_v3 = vmul.f32 1.442695, %v480_v2 }
 0x1ac   : > { %916 = vpow2.f32 %v481_v3 }
 0x1b2   : > { %v917_v4 = vpop.eup %916 }
 0x1b3   : > { %v483_v5 = vsel %vm476_vm1, %v917_v4, 0.0 }
 0x1b4   : > { %484 = vadd.xlane.f32.xlu0 %v483_v5 }
 0x1c8   : > { %726 = vrot.lane.b32.xlu0 %v407_v53, %s942_s24  ;;  %v792_v53 = vld [vmem:[%s1271_s7 + $0x78] sm:$0xff] }
 0x200   : > { %v661_v12 = vpop.xlane.xlu1 %660 }
 0x201   : > { %v662_v18 = vsub.f32 %v656_v63, %v661_v12 }
 0x203   : > { %v663_v20 = vmul.f32 1.442695, %v662_v18 }
 0x218   : > { %v556_v16 = vpop.permute.xlu1 %555 }
 0x227   : > { %v485_v13 = vpop.xlane.xlu0 %484 }
 0x228   : > { %918 = vrcp.f32 %v485_v13 }
 0x229   : > { %920 = vpow2.f32 %v663_v20 }
 0x22e   : > { %v919_v14 = vpop.eup %918 }
 0x22f   : > { %v487_v15 = vmul.f32 %v919_v14, %v917_v4  ;;  %v921_v23 = vpop.eup %920  ;;  %v915_v4 = vld [vmem:[%s1272_s8] ss:$0 sm:$0xff] }
 0x230   : > { %v665_v24 = vsel %vm476_vm1, %v921_v23, 0.0 }
 0x231   : > { %885 = vmatmul.msk.f32.vlgmr.msrb.gmra.mxu3 %vm476_vm1, %v487_v15 }
 0x232   : > { %576 = vmatpush.msrb.mxu3 %v556_v16 }
 0x239   : > { %887 = vmatmul.msk.f32.vlgmr.msra.gmra.mxu3 %vm449_vm0, %v516_v9 }
 0x23a   : > { %v727_v17 = vpop.permute.xlu0 %726  ;;  %600 = vmatpush.msra.mxu3 %v584_v45 }
 0x23b   : > { %895 = vmatpush.xpose.msk.msra.mxu0 %vm449_vm0, %v727_v17 }
 0x23c   : > { %601 = vmatpush.msra.mxu3 %v583_v46 }
 0x23e   : > { %602 = vmatpush.msra.mxu3 %v582_v47 }
 0x240   : > { %603 = vmatpush.msra.mxu3 %v581_v48 }
 0x2b4   : > { %v508_v19 = vpop.f32.mrf.mxu3 }
 0x2b5   : > { %890 = vmatmul.msk.f32.vlgmr.msrb.gmra.mxu0 %vm449_vm0, %v508_v19 }
 0x2bc   : > { %v540_v21 = vpop.f32.mrf.mxu3 }
 0x2bd   : > { %896 = vmatmul.msk.f32.vlgmr.msra.gmra.mxu0 %vm449_vm0, %v725_v11  ;;  %v543_v22 = vsel %vm476_vm1, %v540_v21, -inf }
 0x2be   : > { %544 = vmax.xlane.f32.xlu2 %v543_v22 }
 0x2c6   : > { %666 = vadd.xlane.f32.xlu2 %v665_v24 }
 0x331   : > { %v545_v25 = vpop.xlane.xlu2 %544 }
 0x332   : > { %v546_v26 = vsub.f32 %v540_v21, %v545_v25  ;;  %v1201_v27 = vpop.f32.mrf.mxu0 }
 0x334   : > { %v547_v28 = vmul.f32 1.442695, %v546_v26 }
 0x336   : > { %922 = vpow2.f32 %v547_v28 }
 0x339   : > { %v667_v33 = vpop.xlane.xlu2 %666 }
 0x33a   : > { %v749_v29 = vpop.f32.mrf.mxu0 }
 0x33b   : > { %v752_v30 = vsel %vm476_vm1, %v749_v29, -inf }
 0x33c   : > { %v923_v31 = vpop.eup %922  ;;  %753 = vmax.xlane.f32.xlu0 %v752_v30 }
 0x33d   : > { %v549_v32 = vsel %vm476_vm1, %v923_v31, 0.0 }
 0x33e   : > { %550 = vadd.xlane.f32.xlu2 %v549_v32 }
 0x350   : > { %670 = vrot.lane.b32.xlu0 %v1171_v57, %s940_s22 }
 0x3af   : > { %v754_v34 = vpop.xlane.xlu0 %753 }
 0x3b0   : > { %v755_v35 = vsub.f32 %v749_v29, %v754_v34 }
 0x3b1   : > { %v551_v36 = vpop.xlane.xlu2 %550 }
 0x3b2   : > { %v756_v37 = vmul.f32 1.442695, %v755_v35  ;;  %924 = vrcp.f32 %v551_v36 }
 0x3b4   : > { %926 = vpow2.f32 %v756_v37 }
 0x3b5   : > { %928 = vrcp.f32 %v667_v33 }
 0x3b8   : > { %v925_v38 = vpop.eup %924 }
 0x3b9   : > { %v553_v39 = vmul.f32 %v925_v38, %v923_v31 }
 0x3ba   : > { %v927_v40 = vpop.eup %926 }
 0x3bb   : > { %888 = vmatmul.msk.f32.vlgmr.msrb.gmra.mxu3 %vm476_vm1, %v553_v39  ;;  %v758_v41 = vsel %vm476_vm1, %v927_v40, 0.0  ;;  %v929_v42 = vpop.eup %928 }
 0x3bc   : > { %759 = vadd.xlane.f32.xlu2 %v758_v41  ;;  %v669_v44 = vmul.f32 %v929_v42, %v921_v23  ;;  %715 = vmatpush.msrb.mxu3 %v699_v49 }
 0x3be   : > { %716 = vmatpush.msrb.mxu3 %v698_v50 }
 0x3c0   : > { %717 = vmatpush.msrb.mxu3 %v697_v51 }
 0x3c2   : > { %v671_v43 = vpop.permute.xlu0 %670  ;;  %718 = vmatpush.msrb.mxu3 %v696_v52 }
 0x3c3   : > { %691 = vmatpush.msrb.mxu2 %v671_v43 }
 0x3c4   : > { %893 = vmatmul.msk.f32.vlgmr.msrb.gmra.mxu2 %vm476_vm1, %v669_v44 }
 0x3c5   : > { %808 = vmatpush.msra.mxu2 %v792_v53 }
 0x3c7   : > { %809 = vmatpush.msra.mxu2 %v791_v54 }
 0x3c9   : > { %810 = vmatpush.msra.mxu2 %v790_v55 }
 0x3cb   : > { %811 = vmatpush.msra.mxu2 %v789_v62 }
 0x3d4   : > { %763 = vrot.lane.b32.xlu2 %v1171_v57, %s942_s24 }
 0x42f   : > { %v760_v56 = vpop.xlane.xlu2 %759 }
 0x430   : > { %930 = vrcp.f32 %v760_v56 }
 0x436   : > { %v931_v57 = vpop.eup %930 }
 0x437   : > { %v762_v58 = vmul.f32 %v931_v57, %v927_v40  ;;  %v764_v59 = vpop.permute.xlu2 %763 }
 0x438   : > { %784 = vmatpush.msra.mxu1 %v764_v59 }
 0x439   : > { %897 = vmatmul.msk.f32.vlgmr.msra.gmra.mxu1 %vm476_vm1, %v762_v58 }
 0x43e   : > { %v578_v60 = vpop.f32.mrf.mxu3 }
 0x43f   : > { %889 = vmatmul.msk.f32.vlgmr.msra.gmra.mxu3 %vm449_vm0, %v578_v60 }
 0x447   : > { %v693_v61 = vpop.f32.mrf.mxu2 }
 0x448   : > { %894 = vmatmul.msk.f32.vlgmr.msrb.gmra.mxu3 %vm449_vm0, %v693_v61 }
 0x4b6   : > { %v786_v63 = vpop.f32.mrf.mxu1 }
 0x4b7   : > { %898 = vmatmul.msk.f32.vlgmr.msra.gmra.mxu2 %vm449_vm0, %v786_v63 }
 0x4c2   : > { %v605_v0 = vpop.f32.mrf.mxu3 }
 0x4c3   : > { %v629_v2 = vadd.f32 %v1201_v27, %v605_v0 }
 0x4cb   : > { %v720_v1 = vpop.f32.mrf.mxu3 }
 0x4cc   : > { %v723_v3 = vadd.f32 %v720_v1, %v629_v2 }
 0x53a   : > { %v813_v5 = vpop.f32.mrf.mxu2 }
 0x53b   : > { %v816_v6 = vadd.f32 %v813_v5, %v723_v3 }
 0x53d   : > { %v821_v7 = vadd.f32 %v915_v4, %v816_v6 }
 0x53f   : > { %822 = vst [vmem:[%s327_s27] sm:$0xff] %v821_v7 }
 0x540 PF: > { %s19_s30 = sadd.s32 1, %s938_s30  }
 0x541   : > { %p16_p4 = scmp.ge.s32.totalorder %s19_s30, 4  }
 0x543   :  { %18 = sbr.rel (!%p16_p4) target bundleno = 1 (0x1), region = 86 }

</bundles_post_ra>
